<compile_context>
chip_gen: v7x
topology: tpu7x:2x2x1
jax: 0.10.0
libtpu: 0.0.40
codegen_flags: <defaults>
</compile_context>

<pallas_src>
import functools
import numpy as np
import jax
import jax.numpy as jnp
from jax import lax
from jax.experimental import pallas as pl
from jax.experimental.pallas import tpu as pltpu


def _round_up(x, m):
    return (x + m - 1) // m * m


# --------------------- kernel 1: batched input projection ------------------ #
def input_proj_kernel(x_ref, wih_ref, b_ref, out_ref):
    # x_ref: (T_pad*Bp, D), wih_ref: (D, 4Hp), b_ref: (1, 4Hp) -> out: (T_pad*Bp, 4Hp)
    out_ref[...] = (
        jnp.dot(x_ref[...], wih_ref[...], preferred_element_type=jnp.float32)
        + b_ref[...]
    )


def input_projection(x_flat, w_ih_t_p, bias_p):
    r, d = x_flat.shape
    g = w_ih_t_p.shape[1]
    return pl.pallas_call(
        input_proj_kernel,
        out_shape=jax.ShapeDtypeStruct((r, g), jnp.float32),
        cost_estimate=pl.CostEstimate(
            flops=2 * r * d * g,
            transcendentals=0,
            bytes_accessed=4 * (r * d + d * g + g + r * g),
        ),
    )(x_flat, w_ih_t_p, bias_p)


# ----------------- kernel 2: time-blocked LSTM recurrence ------------------ #
def lstm_recurrence_kernel(pg_ref, whh_ref, out_ref, h_sc, c_sc, *, tc, t_total, hp):
    """Each grid step consumes Tc precomputed pregate slabs; only h @ W_hh^T remains
    on the sequential critical path.  PyTorch gate order: i, f, g, o."""
    blk = pl.program_id(0)

    @pl.when(blk == 0)
    def _init():
        h_sc[...] = jnp.zeros_like(h_sc)
        c_sc[...] = jnp.zeros_like(c_sc)

    def step(s, carry):
        h, c = carry
        gates = pg_ref[s] + jnp.dot(h, whh_ref[...],
                                    preferred_element_type=jnp.float32)   # (Bp, 4Hp)
        # Hp is a multiple of 128, so every gate slice is lane-aligned (no relayout).
        i_g = jax.nn.sigmoid(gates[:, 0 * hp:1 * hp])
        f_g = jax.nn.sigmoid(gates[:, 1 * hp:2 * hp])
        g_g = jnp.tanh(gates[:, 2 * hp:3 * hp])
        o_g = jax.nn.sigmoid(gates[:, 3 * hp:4 * hp])
        c_new = f_g * c + i_g * g_g
        h_new = o_g * jnp.tanh(c_new)
        # Mask out the time-padding steps introduced for Tc blocking (t >= true T).
        valid = (blk * tc + s) < t_total
        h = jnp.where(valid, h_new, h)
        c = jnp.where(valid, c_new, c)
        return h, c

    h, c = lax.fori_loop(0, tc, step, (h_sc[...], c_sc[...]), unroll=True)
    h_sc[...] = h
    c_sc[...] = c

    @pl.when(blk == pl.num_programs(0) - 1)
    def _finalize():
        out_ref[...] = h.astype(out_ref.dtype)


def lstm_last_hidden(pregates, w_hh_t_p, *, t_total, tc):
    t_pad, bp, g = pregates.shape
    hp = g // 4
    n_blk = t_pad // tc
    kernel = functools.partial(lstm_recurrence_kernel, tc=tc, t_total=t_total, hp=hp)
    return pl.pallas_call(
        kernel,
        out_shape=jax.ShapeDtypeStruct((bp, hp), jnp.float32),
        grid_spec=pltpu.PrefetchScalarGridSpec(
            num_scalar_prefetch=0,
            grid=(n_blk,),
            in_specs=[
                pl.BlockSpec((tc, bp, g), lambda i: (i, 0, 0)),   # Tc pregate slabs
                pl.BlockSpec((hp, g), lambda i: (0, 0)),          # W_hh^T (resident)
            ],
            out_specs=pl.BlockSpec((bp, hp), lambda i: (0, 0)),   # same block all steps
            scratch_shapes=[
                pltpu.VMEM((bp, hp), jnp.float32),   # h state (persists across grid)
                pltpu.VMEM((bp, hp), jnp.float32),   # c state
            ],
        ),
        compiler_params=pltpu.CompilerParams(
            dimension_semantics=("arbitrary",),   # time recurrence is sequential
        ),
        cost_estimate=pl.CostEstimate(
            flops=2 * t_pad * bp * hp * g + 12 * t_pad * bp * g,
            transcendentals=5 * t_pad * bp * hp,
            bytes_accessed=4 * (t_pad * bp * g + hp * g + bp * hp),
        ),
    )(pregates, w_hh_t_p)


# ------------------------------- glue (JAX) -------------------------------- #
def pad_sequence_time_major(flat_x, lens, t_pad, b_pad):
    """pad_sequence(torch.split(x, lens), padding_value=0) laid out time-major
    (T_pad, B_pad, D), built with a single vectorized scatter (no per-batch loop)."""
    lens_np = np.asarray(lens)
    n, d = flat_x.shape
    offsets = np.concatenate([[0], np.cumsum(lens_np)[:-1]])
    b_idx = np.repeat(np.arange(len(lens_np)), lens_np)   # (N,)
    t_idx = np.arange(n) - offsets[b_idx]                  # (N,)
    out = jnp.zeros((t_pad, b_pad, d), flat_x.dtype)
    return out.at[t_idx, b_idx].set(flat_x)


def pad_gate_cols(w, h, hp):
    """(rows, 4h) -> (rows, 4hp): gate block k is placed at lane offset k*hp (zeros elsewhere)."""
    rows = w.shape[0]
    out = jnp.zeros((rows, 4 * hp), w.dtype)
    for k in range(4):
        out = out.at[:, k * hp: k * hp + h].set(w[:, k * h:(k + 1) * h])
    return out


def prepare_params(w_ih_t, w_hh_t, b_ih, b_hh, hidden_size):
    h = hidden_size
    hp = _round_up(h, 128)
    w_ih_t_p = pad_gate_cols(w_ih_t, h, hp)                                 # (D, 4Hp)
    w_hh_rows = jnp.concatenate(
        [w_hh_t, jnp.zeros((hp - h, 4 * h), w_hh_t.dtype)], axis=0)         # (Hp, 4H)
    w_hh_t_p = pad_gate_cols(w_hh_rows, h, hp)                              # (Hp, 4Hp)
    bias_p = pad_gate_cols((b_ih + b_hh).reshape(1, 4 * h), h, hp)          # (1, 4Hp)
    return {"w_ih_t": w_ih_t_p, "w_hh_t": w_hh_t_p, "bias": bias_p, "H": h, "Hp": hp}


def geo_rnn_forward(flat_x, lens, params, tc=8):
    """Returns hidden[-1] of a single-layer unidirectional LSTM: (batch, hidden_size)."""
    d = flat_x.shape[1]
    batch = len(lens)
    t = int(max(lens))
    bp = _round_up(batch, 8)
    n_blk = pl.cdiv(t, tc)
    t_pad = n_blk * tc
    hp = params["Hp"]

    x_pad = pad_sequence_time_major(flat_x, lens, t_pad, bp)        # (T_pad, Bp, D)
    # One big MXU-friendly GEMM for the input projection of every (t, b) pair.
    pregates = input_projection(
        x_pad.reshape(t_pad * bp, d), params["w_ih_t"], params["bias"]
    ).reshape(t_pad, bp, 4 * hp)
    h_last = lstm_last_hidden(pregates, params["w_hh_t"], t_total=t, tc=tc)
    return h_last[:batch, :params["H"]]


# --------------------------- pure-JAX reference ---------------------------- #
def lstm_reference(flat_x, lens, w_ih_t, w_hh_t, b_ih, b_hh):
    """PyTorch-equivalent reference: pad_sequence + LSTM over all T steps, hidden[-1]."""
    lens = list(lens)
    batch = len(lens)
    t = int(max(lens))
    d = flat_x.shape[1]
    h_size = w_hh_t.shape[0]
    x_pad = np.zeros((t, batch, d), np.float32)
    off = 0
    for i, L in enumerate(lens):
        x_pad[:L, i, :] = np.asarray(flat_x[off:off + L])
        off += L
    x_pad = jnp.asarray(x_pad)
    bias = b_ih + b_hh

    def step(carry, x_t):
        h, c = carry
        gates = x_t @ w_ih_t + h @ w_hh_t + bias
        i = jax.nn.sigmoid(gates[:, 0 * h_size:1 * h_size])
        f = jax.nn.sigmoid(gates[:, 1 * h_size:2 * h_size])
        g = jnp.tanh(gates[:, 2 * h_size:3 * h_size])
        o = jax.nn.sigmoid(gates[:, 3 * h_size:4 * h_size])
        c = f * c + i * g
        h = o * jnp.tanh(c)
        return (h, c), None

    init = (jnp.zeros((batch, h_size), jnp.float32), jnp.zeros((batch, h_size), jnp.float32))
    (h, _), _ = lax.scan(step, init, x_pad)
    return h


# ---------------------------------- main ----------------------------------- #
if __name__ == "__main__":
    input_size = 4        # D
    hidden_size = 32      # H
    lens = [5, 9, 3]      # ragged sequence lengths; batch = 3, T = max = 9
    total = sum(lens)

    key = jax.random.PRNGKey(0)
    k_x, k_wi, k_wh, k_bi, k_bh = jax.random.split(key, 5)
    scale = 1.0 / np.sqrt(hidden_size)   # PyTorch LSTM default init range

    flat_x = jax.random.normal(k_x, (total, input_size), dtype=jnp.float32)
    # PyTorch stores weight_ih_l0 as (4H, D); we keep the transposed (D, 4H) layout.
    w_ih_t = jax.random.uniform(k_wi, (input_size, 4 * hidden_size),
                                minval=-scale, maxval=scale, dtype=jnp.float32)
    w_hh_t = jax.random.uniform(k_wh, (hidden_size, 4 * hidden_size),
                                minval=-scale, maxval=scale, dtype=jnp.float32)
    b_ih = jax.random.uniform(k_bi, (4 * hidden_size,),
                              minval=-scale, maxval=scale, dtype=jnp.float32)
    b_hh = jax.random.uniform(k_bh, (4 * hidden_size,),
                              minval=-scale, maxval=scale, dtype=jnp.float32)

    params = prepare_params(w_ih_t, w_hh_t, b_ih, b_hh, hidden_size)

    out = geo_rnn_forward(flat_x, lens, params, tc=8)
    out = jax.block_until_ready(out)               # (batch, hidden_size) = (3, 32)

    ref = lstm_reference(flat_x, lens, w_ih_t, w_hh_t, b_ih, b_hh)
    np.testing.assert_allclose(np.asarray(out), np.asarray(ref), rtol=1e-5, atol=1e-5)

    print("KERNEL_OK")
</pallas_src>

<mosaic_0001>
module attributes {stable_mosaic.version = 11 : i64} {
  func.func @input_proj_kernel(%arg0: memref<128x4xf32, #tpu.memory_space<vmem>>, %arg1: memref<4x512xf32, #tpu.memory_space<vmem>>, %arg2: memref<1x512xf32, #tpu.memory_space<vmem>>, %arg3: memref<128x512xf32, #tpu.memory_space<vmem>>) attributes {dimension_semantics = [], scalar_prefetch = 0 : i64, scratch_operands = 0 : i64, tpu.core_type = #tpu.core_type<tc>} {
    %c0 = arith.constant 0 : index
    %c0_0 = arith.constant 0 : index
    %0 = vector.load %arg0[%c0, %c0_0] : memref<128x4xf32, #tpu.memory_space<vmem>>, vector<128x4xf32>
    %c0_1 = arith.constant 0 : index
    %c0_2 = arith.constant 0 : index
    %1 = vector.load %arg1[%c0_1, %c0_2] : memref<4x512xf32, #tpu.memory_space<vmem>>, vector<4x512xf32>
    %cst = arith.constant dense<0.000000e+00> : vector<128x512xf32>
    %2 = tpu.matmul %0, %1, %cst {dimension_numbers = #tpu.dot_dimension_numbers<[1], [0], [0], [1], [0, 0, 1, 1], [], []>} : vector<128x4xf32>, vector<4x512xf32>, vector<128x512xf32> -> vector<128x512xf32>
    %c0_3 = arith.constant 0 : index
    %c0_4 = arith.constant 0 : index
    %3 = vector.load %arg2[%c0_3, %c0_4] : memref<1x512xf32, #tpu.memory_space<vmem>>, vector<1x512xf32>
    %4 = vector.broadcast %3 : vector<1x512xf32> to vector<128x512xf32>
    %5 = arith.addf %2, %4 : vector<128x512xf32>
    %c0_5 = arith.constant 0 : index
    %c0_6 = arith.constant 0 : index
    %6 = vector.load %arg3[%c0_5, %c0_6] : memref<128x512xf32, #tpu.memory_space<vmem>>, vector<128x512xf32>
    tpu.vector_store %arg3[%c0_5, %c0_6], %5 {strides = array<i32>} : memref<128x512xf32, #tpu.memory_space<vmem>>, vector<128x512xf32>,
    return
  }
}

</mosaic_0001>

<bundles_post_ra>
// kernel: tpu_custom_call.1
= control target key start
LH: loop header
LB: loop body
LE: loop exit
PB: predicated region body
PF: predicated region fallthrough
CT: control target
= control target key end

     0   :  { %vm108_vm0 = vcmask 1043456   ;;  %v585_v4 = vmov 0.0   ;;  %vm59_vm1 = vcmask 31744   ;;  %s814_s0 = inlined_call_operand.vmem [shape: f32[128,4], index: 0, kind: input, shape index: {}]   ;;  %s815_s1 = inlined_call_operand.vmem [shape: f32[4,512], index: 1, kind: input, shape index: {}]   ;;  %s816_s2 = inlined_call_operand.vmem [shape: f32[1,512], index: 2, kind: input, shape index: {}]   ;;  %s817_s3 = inlined_call_operand.hbm [shape: f32[128,512], index: 3, kind: output, shape index: {}]  }
   0x1   :  { %v31_v0 = vld [vmem:[%s815_s1] sm:$0xff]  ;;  %v32_v1 = vld [vmem:[%s815_s1 + $0x8] sm:$0xff]  ;;  %181 = vmatprep.mubr.f32.mxu0 %v585_v4  ;;  %342 = vmatprep.mubr.f32.mxu1 %v585_v4 }
   0x2   :  { %v57_v2 = vcombine.high %v31_v0, %v31_v0  ;;  %v58_v3 = vcombine.high %v32_v1, %v32_v1  ;;  %v15_v5 = vld [vmem:[%s814_s0] sm:$0xff]  ;;  %v16_v6 = vld [vmem:[%s814_s0 + $0x8] sm:$0xff] }
   0x4   :  { %519 = vmatprep.subr.msk.mxu0 %vm108_vm0, %v57_v2  ;;  %537 = vmatprep.subr.msk.mxu1 %vm108_vm0, %v58_v3 }
   0x5   :  { %520 = vmatpush1.msk.msra.mxu0 %vm108_vm0, %v31_v0  ;;  %538 = vmatpush1.msk.msra.mxu1 %vm108_vm0, %v32_v1 }
   0x6   :  { %521 = vmatmul.mubr.msk.f32.vlgmr.msra.gmra.mrb[0].mxu0 %vm59_vm1, %v15_v5  ;;  %539 = vmatmul.mubr.msk.f32.vlgmr.msra.gmra.mrb[0].mxu1 %vm59_vm1, %v15_v5 }
   0x7   :  { %187 = vmatprep.mubr.f32.mxu0 %v585_v4  ;;  %348 = vmatprep.mubr.f32.mxu1 %v585_v4 }
   0x8   :  { %8 = vsyncpa [#allocation3], 0  ;;  %v17_v7 = vld [vmem:[%s814_s0 + $0x10] sm:$0xff]  ;;  %v18_v8 = vld [vmem:[%s814_s0 + $0x18] sm:$0xff]  ;;  %v35_v21 = vlaneseq }
   0x9   :  { %v19_v9 = vld [vmem:[%s814_s0 + $0x20] sm:$0xff]  ;;  %v20_v10 = vld [vmem:[%s814_s0 + $0x28] sm:$0xff]  ;;  %v21_v11 = vld [vmem:[%s814_s0 + $0x30] sm:$0xff] }
   0xa   :  { %522 = vmatmul.mubr.msk.f32.gmra.mrb[2].mxu0 %vm59_vm1, %v16_v6  ;;  %540 = vmatmul.mubr.msk.f32.gmra.mrb[2].mxu1 %vm59_vm1, %v16_v6  ;;  %v22_v12 = vld [vmem:[%s814_s0 + $0x38] sm:$0xff]  ;;  %v23_v13 = vld [vmem:[%s814_s0 + $0x40] sm:$0xff]  ;;  %v24_v14 = vld [vmem:[%s814_s0 + $0x48] sm:$0xff]  ;;  %v36_v22 = vshrl.u32 %v35_v21, 7 }
   0xb   :  { %193 = vmatprep.mubr.f32.mxu0 %v585_v4  ;;  %354 = vmatprep.mubr.f32.mxu1 %v585_v4  ;;  %v25_v15 = vld [vmem:[%s814_s0 + $0x50] sm:$0xff]  ;;  %v26_v16 = vld [vmem:[%s814_s0 + $0x58] sm:$0xff]  ;;  %v27_v17 = vld [vmem:[%s814_s0 + $0x60] sm:$0xff] }
   0xc   :  { %v28_v18 = vld [vmem:[%s814_s0 + $0x68] sm:$0xff]  ;;  %v29_v19 = vld [vmem:[%s814_s0 + $0x70] sm:$0xff]  ;;  %v30_v20 = vld [vmem:[%s814_s0 + $0x78] sm:$0xff]  ;;  %v37_v23 = vsub.s32 0, %v36_v22  ;;  %v45_v24 = vsub.s32 2, %v36_v22  ;;  %v41_v26 = vsub.s32 1, %v36_v22 }
   0xd   :  { %v33_v25 = vld [vmem:[%s816_s2] sm:$0xf]  ;;  %v49_v27 = vsub.s32 3, %v36_v22  ;;  %s586_s0 = smov [#allocation2]  }
   0xe   :  { %523 = vmatmul.mubr.msk.f32.gmra.mrb[4].mxu0 %vm59_vm1, %v17_v7  ;;  %541 = vmatmul.mubr.msk.f32.gmra.mrb[4].mxu1 %vm59_vm1, %v17_v7  ;;  %v730_v28 = vrot.slane %v33_v25, %v37_v23  ;;  %v732_v29 = vrot.slane %v33_v25, %v45_v24  ;;  %v734_v30 = vrot.slane %v33_v25, %v41_v26  ;;  %s508_s2 = sshll.u32 %s586_s0, 4  ;;  %s509_s2 = int_to_ptr.vmem [resolvable:$true] %s508_s2 }
   0xf   :  { %199 = vmatprep.mubr.f32.mxu0 %v585_v4  ;;  %360 = vmatprep.mubr.f32.mxu1 %v585_v4  ;;  %v736_v31 = vrot.slane %v33_v25, %v49_v27  ;;  %s561_s21 = scalar_lea.vmem %s509_s2, 8192  ;;  %p566_p1 = scmp.lt.s32.totalorder %s509_s2, %s509_s2 }
  0x10   :  { %p562_p0 = scmp.ne.s32.totalorder %s509_s2, %s561_s21  ;;  %p567_p2 = scmp.lt.s32.totalorder %s561_s21, %s561_s21 }
  0x12   :  { %524 = vmatmul.mubr.msk.f32.gmra.mrb[6].mxu0 %vm59_vm1, %v18_v8  ;;  %542 = vmatmul.mubr.msk.f32.gmra.mrb[6].mxu1 %vm59_vm1, %v18_v8  ;;  %p568_p3 = por %p567_p2, %p566_p1 }
  0x13   :  { %205 = vmatprep.mubr.f32.mxu0 %v585_v4  ;;  %366 = vmatprep.mubr.f32.mxu1 %v585_v4 }
  0x14   :  { %p569_p4 = pnand %p568_p3, %p562_p0 }
  0x16   :  { %525 = vmatmul.mubr.msk.f32.gmra.mrb[8].mxu0 %vm59_vm1, %v19_v9  ;;  %543 = vmatmul.mubr.msk.f32.gmra.mrb[8].mxu1 %vm59_vm1, %v19_v9 }
  0x17   :  { %211 = vmatprep.mubr.f32.mxu0 %v585_v4  ;;  %372 = vmatprep.mubr.f32.mxu1 %v585_v4 }
  0x1a   :  { %526 = vmatmul.mubr.msk.f32.gmra.mrb[10].mxu0 %vm59_vm1, %v20_v10  ;;  %544 = vmatmul.mubr.msk.f32.gmra.mrb[10].mxu1 %vm59_vm1, %v20_v10 }
  0x1b   :  { %217 = vmatprep.mubr.f32.mxu0 %v585_v4  ;;  %378 = vmatprep.mubr.f32.mxu1 %v585_v4 }
  0x1e   :  { %527 = vmatmul.mubr.msk.f32.gmra.mrb[12].mxu0 %vm59_vm1, %v21_v11  ;;  %545 = vmatmul.mubr.msk.f32.gmra.mrb[12].mxu1 %vm59_vm1, %v21_v11 }
  0x1f   :  { %223 = vmatprep.mubr.f32.mxu0 %v585_v4  ;;  %384 = vmatprep.mubr.f32.mxu1 %v585_v4 }
  0x22   :  { %528 = vmatmul.mubr.msk.f32.gmra.mrb[14].mxu0 %vm59_vm1, %v22_v12  ;;  %546 = vmatmul.mubr.msk.f32.gmra.mrb[14].mxu1 %vm59_vm1, %v22_v12 }
  0x23   :  { %229 = vmatprep.mubr.f32.mxu0 %v585_v4  ;;  %390 = vmatprep.mubr.f32.mxu1 %v585_v4 }
  0x26   :  { %529 = vmatmul.mubr.msk.f32.gmra.mrb[16].mxu0 %vm59_vm1, %v23_v13  ;;  %547 = vmatmul.mubr.msk.f32.gmra.mrb[16].mxu1 %vm59_vm1, %v23_v13 }
  0x27   :  { %235 = vmatprep.mubr.f32.mxu0 %v585_v4  ;;  %396 = vmatprep.mubr.f32.mxu1 %v585_v4 }
  0x2a   :  { %530 = vmatmul.mubr.msk.f32.gmra.mrb[18].mxu0 %vm59_vm1, %v24_v14  ;;  %548 = vmatmul.mubr.msk.f32.gmra.mrb[18].mxu1 %vm59_vm1, %v24_v14 }
  0x2b   :  { %241 = vmatprep.mubr.f32.mxu0 %v585_v4  ;;  %402 = vmatprep.mubr.f32.mxu1 %v585_v4 }
  0x2e   :  { %531 = vmatmul.mubr.msk.f32.gmra.mrb[20].mxu0 %vm59_vm1, %v25_v15  ;;  %549 = vmatmul.mubr.msk.f32.gmra.mrb[20].mxu1 %vm59_vm1, %v25_v15 }
  0x2f   :  { %247 = vmatprep.mubr.f32.mxu0 %v585_v4  ;;  %408 = vmatprep.mubr.f32.mxu1 %v585_v4 }
  0x32   :  { %532 = vmatmul.mubr.msk.f32.gmra.mrb[22].mxu0 %vm59_vm1, %v26_v16  ;;  %550 = vmatmul.mubr.msk.f32.gmra.mrb[22].mxu1 %vm59_vm1, %v26_v16 }
  0x33   :  { %253 = vmatprep.mubr.f32.mxu0 %v585_v4  ;;  %414 = vmatprep.mubr.f32.mxu1 %v585_v4 }
  0x36   :  { %533 = vmatmul.mubr.msk.f32.gmra.mrb[24].mxu0 %vm59_vm1, %v27_v17  ;;  %551 = vmatmul.mubr.msk.f32.gmra.mrb[24].mxu1 %vm59_vm1, %v27_v17 }
  0x37   :  { %259 = vmatprep.mubr.f32.mxu0 %v585_v4  ;;  %420 = vmatprep.mubr.f32.mxu1 %v585_v4 }
  0x3a   :  { %534 = vmatmul.mubr.msk.f32.gmra.mrb[26].mxu0 %vm59_vm1, %v28_v18  ;;  %552 = vmatmul.mubr.msk.f32.gmra.mrb[26].mxu1 %vm59_vm1, %v28_v18 }
  0x3b   :  { %265 = vmatprep.mubr.f32.mxu0 %v585_v4  ;;  %426 = vmatprep.mubr.f32.mxu1 %v585_v4 }
  0x3e   :  { %535 = vmatmul.mubr.msk.f32.gmra.mrb[28].mxu0 %vm59_vm1, %v29_v19  ;;  %553 = vmatmul.mubr.msk.f32.gmra.mrb[28].mxu1 %vm59_vm1, %v29_v19 }
  0x3f   :  { %271 = vmatprep.mubr.f32.mxu0 %v585_v4  ;;  %432 = vmatprep.mubr.f32.mxu1 %v585_v4 }
  0x42   :  { %536 = vmatmul.mubr.msk.f32.gmra.mrb[30].mxu0 %vm59_vm1, %v30_v20  ;;  %554 = vmatmul.mubr.msk.f32.gmra.mrb[30].mxu1 %vm59_vm1, %v30_v20 }
  0xd9   :  { %v183_v32 = vpop.f32.mrb[0].mxu0  ;;  %v344_v33 = vpop.f32.mrb[0].mxu1 }
  0xda   :  { %v184_v34 = vadd.f32 %v183_v32, %v730_v28  ;;  %v345_v35 = vadd.f32 %v344_v33, %v732_v29  ;;  %v185_v36 = vpop.f32.mrb[1].mxu0  ;;  %v346_v37 = vpop.f32.mrb[1].mxu1 }
  0xdb   :  { %v186_v38 = vadd.f32 %v185_v36, %v734_v30  ;;  %v347_v39 = vadd.f32 %v346_v37, %v736_v31 }
  0xdc   :  { %439 = vst [vmem:[#allocation2] sm:$0xff] %v184_v34  ;;  %441 = vst [vmem:[#allocation2 + $0x10] sm:$0xff] %v345_v35 }
  0xdd   :  { %440 = vst [vmem:[#allocation2 + $0x8] sm:$0xff] %v186_v38  ;;  %442 = vst [vmem:[#allocation2 + $0x18] sm:$0xff] %v347_v39  ;;  %v189_v40 = vpop.f32.mrb[2].mxu0  ;;  %v350_v41 = vpop.f32.mrb[2].mxu1 }
  0xde   :  { %v190_v42 = vadd.f32 %v189_v40, %v730_v28  ;;  %v351_v43 = vadd.f32 %v350_v41, %v732_v29  ;;  %v191_v44 = vpop.f32.mrb[3].mxu0  ;;  %v352_v45 = vpop.f32.mrb[3].mxu1 }
  0xdf   :  { %v192_v46 = vadd.f32 %v191_v44, %v734_v30  ;;  %v353_v47 = vadd.f32 %v352_v45, %v736_v31 }
  0xe0   :  { %443 = vst [vmem:[#allocation2 + $0x20] sm:$0xff] %v190_v42  ;;  %445 = vst [vmem:[#allocation2 + $0x30] sm:$0xff] %v351_v43 }
  0xe1   :  { %444 = vst [vmem:[#allocation2 + $0x28] sm:$0xff] %v192_v46  ;;  %446 = vst [vmem:[#allocation2 + $0x38] sm:$0xff] %v353_v47  ;;  %v195_v48 = vpop.f32.mrb[4].mxu0  ;;  %v356_v49 = vpop.f32.mrb[4].mxu1 }
  0xe2   :  { %v196_v50 = vadd.f32 %v195_v48, %v730_v28  ;;  %v357_v51 = vadd.f32 %v356_v49, %v732_v29  ;;  %v197_v52 = vpop.f32.mrb[5].mxu0  ;;  %v358_v53 = vpop.f32.mrb[5].mxu1 }
  0xe3   :  { %v198_v54 = vadd.f32 %v197_v52, %v734_v30  ;;  %v359_v55 = vadd.f32 %v358_v53, %v736_v31 }
  0xe4   :  { %447 = vst [vmem:[#allocation2 + $0x40] sm:$0xff] %v196_v50  ;;  %449 = vst [vmem:[#allocation2 + $0x50] sm:$0xff] %v357_v51 }
  0xe5   :  { %448 = vst [vmem:[#allocation2 + $0x48] sm:$0xff] %v198_v54  ;;  %450 = vst [vmem:[#allocation2 + $0x58] sm:$0xff] %v359_v55  ;;  %v201_v56 = vpop.f32.mrb[6].mxu0  ;;  %v362_v57 = vpop.f32.mrb[6].mxu1 }
  0xe6   :  { %v202_v58 = vadd.f32 %v201_v56, %v730_v28  ;;  %v363_v59 = vadd.f32 %v362_v57, %v732_v29  ;;  %v203_v60 = vpop.f32.mrb[7].mxu0  ;;  %v364_v61 = vpop.f32.mrb[7].mxu1 }
  0xe7   :  { %v204_v62 = vadd.f32 %v203_v60, %v734_v30  ;;  %v365_v63 = vadd.f32 %v364_v61, %v736_v31 }
  0xe8   :  { %451 = vst [vmem:[#allocation2 + $0x60] sm:$0xff] %v202_v58  ;;  %453 = vst [vmem:[#allocation2 + $0x70] sm:$0xff] %v363_v59 }
  0xe9   :  { %452 = vst [vmem:[#allocation2 + $0x68] sm:$0xff] %v204_v62  ;;  %454 = vst [vmem:[#allocation2 + $0x78] sm:$0xff] %v365_v63  ;;  %v207_v0 = vpop.f32.mrb[8].mxu0  ;;  %v368_v1 = vpop.f32.mrb[8].mxu1 }
  0xea   :  { %v208_v2 = vadd.f32 %v207_v0, %v730_v28  ;;  %v369_v3 = vadd.f32 %v368_v1, %v732_v29  ;;  %v209_v4 = vpop.f32.mrb[9].mxu0  ;;  %v370_v5 = vpop.f32.mrb[9].mxu1 }
  0xeb   :  { %v210_v6 = vadd.f32 %v209_v4, %v734_v30  ;;  %v371_v7 = vadd.f32 %v370_v5, %v736_v31 }
  0xec   :  { %455 = vst [vmem:[#allocation2 + $0x80] sm:$0xff] %v208_v2  ;;  %457 = vst [vmem:[#allocation2 + $0x90] sm:$0xff] %v369_v3 }
  0xed   :  { %456 = vst [vmem:[#allocation2 + $0x88] sm:$0xff] %v210_v6  ;;  %458 = vst [vmem:[#allocation2 + $0x98] sm:$0xff] %v371_v7  ;;  %v213_v8 = vpop.f32.mrb[10].mxu0  ;;  %v374_v9 = vpop.f32.mrb[10].mxu1 }
  0xee   :  { %v214_v10 = vadd.f32 %v213_v8, %v730_v28  ;;  %v375_v11 = vadd.f32 %v374_v9, %v732_v29  ;;  %v215_v12 = vpop.f32.mrb[11].mxu0  ;;  %v376_v13 = vpop.f32.mrb[11].mxu1 }
  0xef   :  { %v216_v14 = vadd.f32 %v215_v12, %v734_v30  ;;  %v377_v15 = vadd.f32 %v376_v13, %v736_v31 }
  0xf0   :  { %459 = vst [vmem:[#allocation2 + $0xa0] sm:$0xff] %v214_v10  ;;  %461 = vst [vmem:[#allocation2 + $0xb0] sm:$0xff] %v375_v11 }
  0xf1   :  { %460 = vst [vmem:[#allocation2 + $0xa8] sm:$0xff] %v216_v14  ;;  %462 = vst [vmem:[#allocation2 + $0xb8] sm:$0xff] %v377_v15  ;;  %v219_v16 = vpop.f32.mrb[12].mxu0  ;;  %v380_v17 = vpop.f32.mrb[12].mxu1 }
  0xf2   :  { %v220_v18 = vadd.f32 %v219_v16, %v730_v28  ;;  %v381_v19 = vadd.f32 %v380_v17, %v732_v29  ;;  %v221_v20 = vpop.f32.mrb[13].mxu0  ;;  %v382_v21 = vpop.f32.mrb[13].mxu1 }
  0xf3   :  { %v222_v22 = vadd.f32 %v221_v20, %v734_v30  ;;  %v383_v23 = vadd.f32 %v382_v21, %v736_v31 }
  0xf4   :  { %463 = vst [vmem:[#allocation2 + $0xc0] sm:$0xff] %v220_v18  ;;  %465 = vst [vmem:[#allocation2 + $0xd0] sm:$0xff] %v381_v19 }
  0xf5   :  { %464 = vst [vmem:[#allocation2 + $0xc8] sm:$0xff] %v222_v22  ;;  %466 = vst [vmem:[#allocation2 + $0xd8] sm:$0xff] %v383_v23  ;;  %v225_v24 = vpop.f32.mrb[14].mxu0  ;;  %v386_v25 = vpop.f32.mrb[14].mxu1 }
  0xf6   :  { %v226_v26 = vadd.f32 %v225_v24, %v730_v28  ;;  %v387_v27 = vadd.f32 %v386_v25, %v732_v29  ;;  %v227_v32 = vpop.f32.mrb[15].mxu0  ;;  %v388_v33 = vpop.f32.mrb[15].mxu1 }
  0xf7   :  { %v228_v34 = vadd.f32 %v227_v32, %v734_v30  ;;  %v389_v35 = vadd.f32 %v388_v33, %v736_v31 }
  0xf8   :  { %467 = vst [vmem:[#allocation2 + $0xe0] sm:$0xff] %v226_v26  ;;  %469 = vst [vmem:[#allocation2 + $0xf0] sm:$0xff] %v387_v27 }
  0xf9   :  { %468 = vst [vmem:[#allocation2 + $0xe8] sm:$0xff] %v228_v34  ;;  %470 = vst [vmem:[#allocation2 + $0xf8] sm:$0xff] %v389_v35  ;;  %v231_v36 = vpop.f32.mrb[16].mxu0  ;;  %v392_v37 = vpop.f32.mrb[16].mxu1 }
  0xfa   :  { %v232_v38 = vadd.f32 %v231_v36, %v730_v28  ;;  %v393_v39 = vadd.f32 %v392_v37, %v732_v29  ;;  %v233_v40 = vpop.f32.mrb[17].mxu0  ;;  %v394_v41 = vpop.f32.mrb[17].mxu1 }
  0xfb   :  { %v234_v42 = vadd.f32 %v233_v40, %v734_v30  ;;  %v395_v43 = vadd.f32 %v394_v41, %v736_v31 }
  0xfc   :  { %471 = vst [vmem:[#allocation2 + $0x100] sm:$0xff] %v232_v38  ;;  %473 = vst [vmem:[#allocation2 + $0x110] sm:$0xff] %v393_v39 }
  0xfd   :  { %472 = vst [vmem:[#allocation2 + $0x108] sm:$0xff] %v234_v42  ;;  %474 = vst [vmem:[#allocation2 + $0x118] sm:$0xff] %v395_v43  ;;  %v237_v44 = vpop.f32.mrb[18].mxu0  ;;  %v398_v45 = vpop.f32.mrb[18].mxu1 }
  0xfe   :  { %v238_v46 = vadd.f32 %v237_v44, %v730_v28  ;;  %v399_v47 = vadd.f32 %v398_v45, %v732_v29  ;;  %v239_v48 = vpop.f32.mrb[19].mxu0  ;;  %v400_v49 = vpop.f32.mrb[19].mxu1 }
  0xff   :  { %v240_v50 = vadd.f32 %v239_v48, %v734_v30  ;;  %v401_v51 = vadd.f32 %v400_v49, %v736_v31 }
 0x100   :  { %475 = vst [vmem:[#allocation2 + $0x120] sm:$0xff] %v238_v46  ;;  %477 = vst [vmem:[#allocation2 + $0x130] sm:$0xff] %v399_v47 }
 0x101   :  { %476 = vst [vmem:[#allocation2 + $0x128] sm:$0xff] %v240_v50  ;;  %478 = vst [vmem:[#allocation2 + $0x138] sm:$0xff] %v401_v51  ;;  %v243_v52 = vpop.f32.mrb[20].mxu0  ;;  %v404_v53 = vpop.f32.mrb[20].mxu1 }
 0x102   :  { %v244_v54 = vadd.f32 %v243_v52, %v730_v28  ;;  %v405_v55 = vadd.f32 %v404_v53, %v732_v29  ;;  %v245_v56 = vpop.f32.mrb[21].mxu0  ;;  %v406_v57 = vpop.f32.mrb[21].mxu1 }
 0x103   :  { %v246_v58 = vadd.f32 %v245_v56, %v734_v30  ;;  %v407_v59 = vadd.f32 %v406_v57, %v736_v31 }
 0x104   :  { %479 = vst [vmem:[#allocation2 + $0x140] sm:$0xff] %v244_v54  ;;  %481 = vst [vmem:[#allocation2 + $0x150] sm:$0xff] %v405_v55 }
 0x105   :  { %480 = vst [vmem:[#allocation2 + $0x148] sm:$0xff] %v246_v58  ;;  %482 = vst [vmem:[#allocation2 + $0x158] sm:$0xff] %v407_v59  ;;  %v249_v60 = vpop.f32.mrb[22].mxu0  ;;  %v410_v61 = vpop.f32.mrb[22].mxu1 }
 0x106   :  { %v250_v62 = vadd.f32 %v249_v60, %v730_v28  ;;  %v411_v63 = vadd.f32 %v410_v61, %v732_v29  ;;  %v251_v0 = vpop.f32.mrb[23].mxu0  ;;  %v412_v1 = vpop.f32.mrb[23].mxu1 }
 0x107   :  { %v252_v2 = vadd.f32 %v251_v0, %v734_v30  ;;  %v413_v3 = vadd.f32 %v412_v1, %v736_v31 }
 0x108   :  { %483 = vst [vmem:[#allocation2 + $0x160] sm:$0xff] %v250_v62  ;;  %485 = vst [vmem:[#allocation2 + $0x170] sm:$0xff] %v411_v63 }
 0x109   :  { %484 = vst [vmem:[#allocation2 + $0x168] sm:$0xff] %v252_v2  ;;  %486 = vst [vmem:[#allocation2 + $0x178] sm:$0xff] %v413_v3  ;;  %v255_v4 = vpop.f32.mrb[24].mxu0  ;;  %v416_v5 = vpop.f32.mrb[24].mxu1 }
 0x10a   :  { %v256_v6 = vadd.f32 %v255_v4, %v730_v28  ;;  %v417_v7 = vadd.f32 %v416_v5, %v732_v29  ;;  %v257_v8 = vpop.f32.mrb[25].mxu0  ;;  %v418_v9 = vpop.f32.mrb[25].mxu1 }
 0x10b   :  { %v258_v10 = vadd.f32 %v257_v8, %v734_v30  ;;  %v419_v11 = vadd.f32 %v418_v9, %v736_v31 }
 0x10c   :  { %487 = vst [vmem:[#allocation2 + $0x180] sm:$0xff] %v256_v6  ;;  %489 = vst [vmem:[#allocation2 + $0x190] sm:$0xff] %v417_v7 }
 0x10d   :  { %488 = vst [vmem:[#allocation2 + $0x188] sm:$0xff] %v258_v10  ;;  %490 = vst [vmem:[#allocation2 + $0x198] sm:$0xff] %v419_v11  ;;  %v261_v12 = vpop.f32.mrb[26].mxu0  ;;  %v422_v13 = vpop.f32.mrb[26].mxu1 }
 0x10e   :  { %v262_v14 = vadd.f32 %v261_v12, %v730_v28  ;;  %v423_v15 = vadd.f32 %v422_v13, %v732_v29  ;;  %v263_v16 = vpop.f32.mrb[27].mxu0  ;;  %v424_v17 = vpop.f32.mrb[27].mxu1 }
 0x10f   :  { %v264_v18 = vadd.f32 %v263_v16, %v734_v30  ;;  %v425_v19 = vadd.f32 %v424_v17, %v736_v31 }
 0x110   :  { %491 = vst [vmem:[#allocation2 + $0x1a0] sm:$0xff] %v262_v14  ;;  %493 = vst [vmem:[#allocation2 + $0x1b0] sm:$0xff] %v423_v15 }
 0x111   :  { %492 = vst [vmem:[#allocation2 + $0x1a8] sm:$0xff] %v264_v18  ;;  %494 = vst [vmem:[#allocation2 + $0x1b8] sm:$0xff] %v425_v19  ;;  %v267_v20 = vpop.f32.mrb[28].mxu0  ;;  %v428_v21 = vpop.f32.mrb[28].mxu1 }
 0x112   :  { %v268_v22 = vadd.f32 %v267_v20, %v730_v28  ;;  %v429_v23 = vadd.f32 %v428_v21, %v732_v29  ;;  %v269_v24 = vpop.f32.mrb[29].mxu0  ;;  %v430_v25 = vpop.f32.mrb[29].mxu1 }
 0x113   :  { %v270_v26 = vadd.f32 %v269_v24, %v734_v30  ;;  %v431_v27 = vadd.f32 %v430_v25, %v736_v31 }
 0x114   :  { %495 = vst [vmem:[#allocation2 + $0x1c0] sm:$0xff] %v268_v22  ;;  %497 = vst [vmem:[#allocation2 + $0x1d0] sm:$0xff] %v429_v23 }
 0x115   :  { %496 = vst [vmem:[#allocation2 + $0x1c8] sm:$0xff] %v270_v26  ;;  %498 = vst [vmem:[#allocation2 + $0x1d8] sm:$0xff] %v431_v27  ;;  %v273_v32 = vpop.f32.mrb[30].mxu0  ;;  %v434_v33 = vpop.f32.mrb[30].mxu1 }
 0x116   :  { %v274_v34 = vadd.f32 %v273_v32, %v730_v28  ;;  %v435_v35 = vadd.f32 %v434_v33, %v732_v29  ;;  %v275_v36 = vpop.f32.mrb[31].mxu0  ;;  %v436_v37 = vpop.f32.mrb[31].mxu1 }
 0x117   :  { %v276_v38 = vadd.f32 %v275_v36, %v734_v30  ;;  %v437_v39 = vadd.f32 %v436_v37, %v736_v31 }
 0x118   :  { %499 = vst [vmem:[#allocation2 + $0x1e0] sm:$0xff] %v274_v34  ;;  %501 = vst [vmem:[#allocation2 + $0x1f0] sm:$0xff] %v435_v35 }
 0x119   :  { %500 = vst [vmem:[#allocation2 + $0x1e8] sm:$0xff] %v276_v38  ;;  %502 = vst [vmem:[#allocation2 + $0x1f8] sm:$0xff] %v437_v39 }
 0x11a   :  { %572 = shalt.err (!%p569_p4)
}
 0x11b   :  { %s573_s24 = scalar_lea.hbm %s817_s3, 8192 }
 0x11c   :  { %p574_p5 = scmp.ne.s32.totalorder %s817_s3, %s573_s24  ;;  %p577_p6 = scmp.lt.u32.totalorder %s573_s24, %s817_s3 }
 0x11e   :  { %p579_p7 = pnand %p577_p6, %p574_p5 }
 0x120   :  { %582 = shalt.err (!%p579_p7)
}
 0x121   :  { %s587_s29 = smov 512   ;;  %s588_s30 = smov 32  }
 0x122   :  { %514 = dma.vmem_to_hbm [thread:$0]  %s509_s2, 8192, %s817_s3, [#allocation3], %s587_s29, %s587_s29, %s588_s30  }
 0x123   :  { %583 = dma.done.wait [#allocation3], 8192  }
 0x124   :  { %584 = vsyncadd [#allocation3], 4294959104 }
 0x125   :  { %518 = vsyncpa [#allocation3], 1 }

</bundles_post_ra>
